<compile_context>
chip_gen: v7x
topology: tpu7x:2x2x1
jax: 0.10.0
libtpu: 0.0.40
codegen_flags: <defaults>
</compile_context>

<pallas_src>
import jax
import jax.numpy as jnp
from jax.experimental import pallas as pl
from jax.experimental.pallas import tpu as pltpu


def diag_lstm_cell_kernel(x_ref, c_ref, p_ref, h_next_ref, c_next_ref):
    """Element-wise diagonal LSTM cell update (VPU/EUP hot path).

    p_ref is an (8, TH) float32 slab:
      rows 0..3 : diag(W_k)+diag(U_k) for gates [i, f, o, c]
      rows 4..7 : biases               for gates [i, f, o, c]
    """
    x = x_ref[...].astype(jnp.float32)      # (TB, TH)
    c = c_ref[...].astype(jnp.float32)      # (TB, TH)
    p = p_ref[...]                          # (8, TH), already f32

    z_i = x * p[0:1, :] + p[4:5, :]
    z_f = x * p[1:2, :] + p[5:6, :]
    z_o = x * p[2:3, :] + p[6:7, :]
    z_c = x * p[3:4, :] + p[7:8, :]

    # sigmoid(z) == 0.5*(1 + tanh(0.5*z)): one EUP push per gate.
    i_g = 0.5 * jnp.tanh(0.5 * z_i) + 0.5
    f_g = 0.5 * jnp.tanh(0.5 * z_f) + 0.5
    o_g = 0.5 * jnp.tanh(0.5 * z_o) + 0.5
    c_t = jnp.tanh(z_c)

    c_next = f_g * c + i_g * c_t
    h_next = o_g * jnp.tanh(c_next)

    h_next_ref[...] = h_next.astype(h_next_ref.dtype)
    c_next_ref[...] = c_next.astype(c_next_ref.dtype)


def _budgets():
    """Per-generation (working-set budget, vmem_limit_bytes)."""
    try:
        kind = jax.devices()[0].device_kind.lower()
    except Exception:  # pragma: no cover - defensive (e.g. CPU interpret mode)
        kind = ""
    if "v5" in kind:
        # v5e: 16 MiB default scoped VMEM; stay comfortably under it.
        return 12 << 20, 16 << 20
    if "v7" in kind:
        # v7x: only 64 MiB physical VMEM per TensorCore -> keep it modest.
        return 20 << 20, 32 << 20
    # v6e (and default): 128 MiB physical, 32 MiB default scoped limit.
    return 24 << 20, 32 << 20


def _choose_tiles(B, H, itemsize, budget_bytes):
    """Pick (tb, th) tiles: lane-dense, sublane-aligned, >=2 grid blocks."""
    def cdiv(a, b):
        return -(-a // b)

    # Sublane multiple for the storage dtype (8 for f32, 16 for bf16, 32 for i8).
    sub = max(8, 32 // itemsize)

    # --- hidden (lane) tile: multiple of 128, preferably dividing H ----------
    if H % 128 != 0:
        th = H                      # unaligned last dim -> must take it whole
    else:
        th = min(H, 2048)           # keep blocks in the ~MiB sweet spot
        while th > 128 and H % th != 0:
            th -= 128

    # --- batch (sublane) tile: fill the remaining double-buffered budget -----
    # working set ~= 2 (double buffer) * 4 streams (x, c, h', c') * tb*th bytes
    tb_max = max(sub, budget_bytes // (2 * 4 * th * itemsize))
    if B < sub:
        tb = B                      # full (small) batch dim is always legal
    else:
        tb_max = min(B, (tb_max // sub) * sub)
        tb = tb_max
        cand = tb_max               # prefer a divisor of B -> unmasked stores
        while cand >= sub:
            if B % cand == 0:
                tb = cand
                break
            cand -= sub

    # --- ensure >=2 grid blocks so pipelining / megacore have work to split --
    if cdiv(B, tb) * cdiv(H, th) < 2:
        if H % 128 == 0 and H >= 256:
            th = max(128, (H // 2 // 128) * 128)
        elif B >= 2 * sub:
            tb = max(sub, (B // 2 // sub) * sub)
    return tb, th


def diag_lstm_cell(x, h, c, wdiag, udiag, bias, *, tb=None, th=None,
                   alias_c=False):
    """One cell step.  `h` is accepted for interface fidelity but — exactly like
    the PyTorch forward — it is never read, so it is NOT passed to the kernel.

    x, c may be f32 or bf16 (bf16 halves HBM traffic); params stay f32 and the
    kernel computes in f32 either way.
    """
    del h  # never read by the original forward -> don't DMA it.
    B, H = x.shape

    # Fold the parameter diagonals + biases once into a single f32 (8, H) slab.
    # Kept in f32 (no cast to x.dtype) so bf16 activations never double-round
    # the parameters.
    params = jnp.concatenate(
        [(wdiag + udiag).astype(jnp.float32), bias.astype(jnp.float32)], axis=0)

    itemsize = jnp.dtype(x.dtype).itemsize
    budget, vmem_limit = _budgets()
    auto_tb, auto_th = _choose_tiles(B, H, itemsize, budget)
    tb = auto_tb if tb is None else tb
    th = auto_th if th is None else th

    grid = (pl.cdiv(B, tb), pl.cdiv(H, th))
    bh_spec = pl.BlockSpec((tb, th), lambda i, j: (i, j))
    p_spec = pl.BlockSpec((8, th), lambda i, j: (0, j))

    # Optional buffer reuse: c (input 1) -> c_next (output 1).  Off by default
    # because it donates the caller's c buffer.
    io_aliases = {1: 1} if alias_c else {}

    h_next, c_next = pl.pallas_call(
        diag_lstm_cell_kernel,
        out_shape=(jax.ShapeDtypeStruct((B, H), x.dtype),
                   jax.ShapeDtypeStruct((B, H), x.dtype)),
        grid_spec=pl.GridSpec(
            grid=grid,
            in_specs=[bh_spec, bh_spec, p_spec],
            out_specs=(bh_spec, bh_spec),
        ),
        compiler_params=pltpu.CompilerParams(
            dimension_semantics=("parallel", "parallel"),
            vmem_limit_bytes=vmem_limit),
        input_output_aliases=io_aliases,
    )(x, c, params)
    return h_next, c_next


def make_params(input_size, hidden_size, dtype=jnp.float32):
    """Deterministic parameter construction mirroring the module's __init__."""
    assert input_size == hidden_size, \
        "forward's element-wise broadcast requires input_size == hidden_size"
    # diag(W1..W4) = 0.1321 ; diag(U1..U4) = 0.1231 ; biases = 1.0
    wdiag = jnp.full((4, hidden_size), 0.1321, dtype=dtype)
    udiag = jnp.full((4, hidden_size), 0.1231, dtype=dtype)
    bias = jnp.ones((4, hidden_size), dtype=dtype)   # rows: [i, f, o, c]
    return wdiag, udiag, bias


def reference_forward(x, h, c, wdiag, udiag, bias):
    """Plain-JAX reference of the exact PyTorch forward semantics."""
    del h  # unused, as in the PyTorch code
    d = (wdiag + udiag).astype(jnp.float32)
    b = bias.astype(jnp.float32)
    xf = x.astype(jnp.float32)
    cf = c.astype(jnp.float32)
    i_g = jax.nn.sigmoid(xf * d[0] + b[0])
    f_g = jax.nn.sigmoid(xf * d[1] + b[1])
    o_g = jax.nn.sigmoid(xf * d[2] + b[2])
    c_t = jnp.tanh(xf * d[3] + b[3])
    c_next = f_g * cf + i_g * c_t
    h_next = o_g * jnp.tanh(c_next)
    return h_next.astype(x.dtype), c_next.astype(x.dtype)


if __name__ == "__main__":
    batch = 16
    hidden = 256          # input_size == hidden_size (required by forward)
    dtype = jnp.float32

    key = jax.random.PRNGKey(0)
    kx, kh, kc = jax.random.split(key, 3)
    x = jax.random.normal(kx, (batch, hidden), dtype=dtype)
    h = jax.random.normal(kh, (batch, hidden), dtype=dtype)  # unused, as in torch
    c = jax.random.normal(kc, (batch, hidden), dtype=dtype)

    wdiag, udiag, bias = make_params(hidden, hidden, dtype)

    h_ref, c_ref = reference_forward(x, h, c, wdiag, udiag, bias)

    h_next, c_next = diag_lstm_cell(x, h, c, wdiag, udiag, bias)
    jax.block_until_ready((h_next, c_next))

    assert jnp.allclose(h_next, h_ref, atol=1e-5, rtol=1e-5)
    assert jnp.allclose(c_next, c_ref, atol=1e-5, rtol=1e-5)

    print("KERNEL_OK")
</pallas_src>

<mosaic_0001>
module attributes {stable_mosaic.version = 11 : i64} {
  func.func @diag_lstm_cell_kernel(%arg0: i32, %arg1: i32, %arg2: memref<16x128xf32, #tpu.memory_space<vmem>>, %arg3: memref<16x128xf32, #tpu.memory_space<vmem>>, %arg4: memref<8x128xf32, #tpu.memory_space<vmem>>, %arg5: memref<16x128xf32, #tpu.memory_space<vmem>>, %arg6: memref<16x128xf32, #tpu.memory_space<vmem>>) attributes {dimension_semantics = [#tpu.dimension_semantics<parallel>, #tpu.dimension_semantics<parallel>], iteration_bounds = array<i64: 1, 2>, scalar_prefetch = 0 : i64, scratch_operands = 0 : i64, tpu.core_type = #tpu.core_type<tc>, window_params = [{transform_indices = @transform_0, window_bounds = array<i64: 16, 128>}, {transform_indices = @transform_1, window_bounds = array<i64: 16, 128>}, {transform_indices = @transform_2, window_bounds = array<i64: 8, 128>}, {transform_indices = @transform_3, window_bounds = array<i64: 16, 128>}, {transform_indices = @transform_4, window_bounds = array<i64: 16, 128>}]} {
    %c0 = arith.constant 0 : index
    %c0_0 = arith.constant 0 : index
    %0 = vector.load %arg2[%c0, %c0_0] : memref<16x128xf32, #tpu.memory_space<vmem>>, vector<16x128xf32>
    %c0_1 = arith.constant 0 : index
    %c0_2 = arith.constant 0 : index
    %1 = vector.load %arg3[%c0_1, %c0_2] : memref<16x128xf32, #tpu.memory_space<vmem>>, vector<16x128xf32>
    %c0_3 = arith.constant 0 : index
    %c0_4 = arith.constant 0 : index
    %2 = vector.load %arg4[%c0_3, %c0_4] : memref<8x128xf32, #tpu.memory_space<vmem>>, vector<8x128xf32>
    %3 = vector.extract_strided_slice %2 {offsets = [0, 0], sizes = [1, 128], strides = [1, 1]} : vector<8x128xf32> to vector<1x128xf32>
    %4 = vector.broadcast %3 : vector<1x128xf32> to vector<16x128xf32>
    %5 = arith.mulf %0, %4 : vector<16x128xf32>
    %6 = vector.extract_strided_slice %2 {offsets = [4, 0], sizes = [1, 128], strides = [1, 1]} : vector<8x128xf32> to vector<1x128xf32>
    %7 = vector.broadcast %6 : vector<1x128xf32> to vector<16x128xf32>
    %8 = arith.addf %5, %7 : vector<16x128xf32>
    %9 = vector.extract_strided_slice %2 {offsets = [1, 0], sizes = [1, 128], strides = [1, 1]} : vector<8x128xf32> to vector<1x128xf32>
    %10 = vector.broadcast %9 : vector<1x128xf32> to vector<16x128xf32>
    %11 = arith.mulf %0, %10 : vector<16x128xf32>
    %12 = vector.extract_strided_slice %2 {offsets = [5, 0], sizes = [1, 128], strides = [1, 1]} : vector<8x128xf32> to vector<1x128xf32>
    %13 = vector.broadcast %12 : vector<1x128xf32> to vector<16x128xf32>
    %14 = arith.addf %11, %13 : vector<16x128xf32>
    %15 = vector.extract_strided_slice %2 {offsets = [2, 0], sizes = [1, 128], strides = [1, 1]} : vector<8x128xf32> to vector<1x128xf32>
    %16 = vector.broadcast %15 : vector<1x128xf32> to vector<16x128xf32>
    %17 = arith.mulf %0, %16 : vector<16x128xf32>
    %18 = vector.extract_strided_slice %2 {offsets = [6, 0], sizes = [1, 128], strides = [1, 1]} : vector<8x128xf32> to vector<1x128xf32>
    %19 = vector.broadcast %18 : vector<1x128xf32> to vector<16x128xf32>
    %20 = arith.addf %17, %19 : vector<16x128xf32>
    %21 = vector.extract_strided_slice %2 {offsets = [3, 0], sizes = [1, 128], strides = [1, 1]} : vector<8x128xf32> to vector<1x128xf32>
    %22 = vector.broadcast %21 : vector<1x128xf32> to vector<16x128xf32>
    %23 = arith.mulf %0, %22 : vector<16x128xf32>
    %24 = vector.extract_strided_slice %2 {offsets = [7, 0], sizes = [1, 128], strides = [1, 1]} : vector<8x128xf32> to vector<1x128xf32>
    %25 = vector.broadcast %24 : vector<1x128xf32> to vector<16x128xf32>
    %26 = arith.addf %23, %25 : vector<16x128xf32>
    %cst = arith.constant 5.000000e-01 : f32
    %27 = vector.broadcast %cst : f32 to vector<16x128xf32>
    %28 = arith.mulf %27, %8 : vector<16x128xf32>
    %29 = math.tanh %28 : vector<16x128xf32>
    %cst_5 = arith.constant 5.000000e-01 : f32
    %30 = vector.broadcast %cst_5 : f32 to vector<16x128xf32>
    %31 = arith.mulf %30, %29 : vector<16x128xf32>
    %cst_6 = arith.constant 5.000000e-01 : f32
    %32 = vector.broadcast %cst_6 : f32 to vector<16x128xf32>
    %33 = arith.addf %31, %32 : vector<16x128xf32>
    %cst_7 = arith.constant 5.000000e-01 : f32
    %34 = vector.broadcast %cst_7 : f32 to vector<16x128xf32>
    %35 = arith.mulf %34, %14 : vector<16x128xf32>
    %36 = math.tanh %35 : vector<16x128xf32>
    %cst_8 = arith.constant 5.000000e-01 : f32
    %37 = vector.broadcast %cst_8 : f32 to vector<16x128xf32>
    %38 = arith.mulf %37, %36 : vector<16x128xf32>
    %cst_9 = arith.constant 5.000000e-01 : f32
    %39 = vector.broadcast %cst_9 : f32 to vector<16x128xf32>
    %40 = arith.addf %38, %39 : vector<16x128xf32>
    %cst_10 = arith.constant 5.000000e-01 : f32
    %41 = vector.broadcast %cst_10 : f32 to vector<16x128xf32>
    %42 = arith.mulf %41, %20 : vector<16x128xf32>
    %43 = math.tanh %42 : vector<16x128xf32>
    %cst_11 = arith.constant 5.000000e-01 : f32
    %44 = vector.broadcast %cst_11 : f32 to vector<16x128xf32>
    %45 = arith.mulf %44, %43 : vector<16x128xf32>
    %cst_12 = arith.constant 5.000000e-01 : f32
    %46 = vector.broadcast %cst_12 : f32 to vector<16x128xf32>
    %47 = arith.addf %45, %46 : vector<16x128xf32>
    %48 = math.tanh %26 : vector<16x128xf32>
    %49 = arith.mulf %40, %1 : vector<16x128xf32>
    %50 = arith.mulf %33, %48 : vector<16x128xf32>
    %51 = arith.addf %49, %50 : vector<16x128xf32>
    %52 = math.tanh %51 : vector<16x128xf32>
    %53 = arith.mulf %47, %52 : vector<16x128xf32>
    %c0_13 = arith.constant 0 : index
    %c0_14 = arith.constant 0 : index
    %54 = vector.load %arg5[%c0_13, %c0_14] : memref<16x128xf32, #tpu.memory_space<vmem>>, vector<16x128xf32>
    tpu.vector_store %arg5[%c0_13, %c0_14], %53 {strides = array<i32>} : memref<16x128xf32, #tpu.memory_space<vmem>>, vector<16x128xf32>,
    %c0_15 = arith.constant 0 : index
    %c0_16 = arith.constant 0 : index
    %55 = vector.load %arg6[%c0_15, %c0_16] : memref<16x128xf32, #tpu.memory_space<vmem>>, vector<16x128xf32>
    tpu.vector_store %arg6[%c0_15, %c0_16], %51 {strides = array<i32>} : memref<16x128xf32, #tpu.memory_space<vmem>>, vector<16x128xf32>,
    return
  }
  func.func @transform_0(%arg0: i32, %arg1: i32) -> (i32, i32) {
    %c0_i32 = arith.constant 0 : i32
    return %arg0, %arg1 : i32, i32
  }
  func.func @transform_1(%arg0: i32, %arg1: i32) -> (i32, i32) {
    %c0_i32 = arith.constant 0 : i32
    return %arg0, %arg1 : i32, i32
  }
  func.func @transform_2(%arg0: i32, %arg1: i32) -> (i32, i32) {
    %c0_i32 = arith.constant 0 : i32
    %c0_i32_0 = arith.constant 0 : i32
    return %c0_i32, %arg1 : i32, i32
  }
  func.func @transform_3(%arg0: i32, %arg1: i32) -> (i32, i32) {
    %c0_i32 = arith.constant 0 : i32
    return %arg0, %arg1 : i32, i32
  }
  func.func @transform_4(%arg0: i32, %arg1: i32) -> (i32, i32) {
    %c0_i32 = arith.constant 0 : i32
    return %arg0, %arg1 : i32, i32
  }
}

</mosaic_0001>

<bundles_post_ra>
// kernel: tpu_custom_call.1
= control target key start
LH: loop header
LB: loop body
LE: loop exit
PB: predicated region body
PF: predicated region fallthrough
CT: control target
= control target key end

     0   :  { %s1316_s0 = inlined_call_operand.hbm [shape: f32[16,256], index: 0, kind: input, shape index: {}]   ;;  %s1317_s1 = inlined_call_operand.hbm [shape: f32[16,256], index: 1, kind: input, shape index: {}]   ;;  %s1318_s2 = inlined_call_operand.hbm [shape: f32[8,256], index: 2, kind: input, shape index: {}]   ;;  %s1319_s3 = inlined_call_operand.hbm [shape: f32[16,256], index: 3, kind: output, shape index: {0}]   ;;  %s1320_s4 = inlined_call_operand.hbm [shape: f32[16,256], index: 4, kind: output, shape index: {1}]  }
   0x1   :  { %1331 = sst [smem:[#allocation19_spill]] %s1316_s0 }
   0x2   :  { %1332 = sst [smem:[#allocation20_spill]] %s1317_s1 }
   0x3   :  { %10 = vsyncpa [#allocation3], 0 }
   0x4   :  { %12 = vsyncpa [#allocation3 + $0x1], 0 }
   0x5   :  { %13 = vsyncpa [#allocation6], 0 }
   0x6   :  { %15 = vsyncpa [#allocation6 + $0x1], 0 }
   0x7   :  { %16 = vsyncpa [#allocation4], 0 }
   0x8   :  { %18 = vsyncpa [#allocation4 + $0x1], 0 }
   0x9   :  { %19 = vsyncpa [#allocation10], 0 }
   0xa   :  { %21 = vsyncpa [#allocation10 + $0x1], 0  ;;  %s996_s15 = smov 0   ;;  %s998_s16 = smov 0  }
   0xb   :  { %s1000_s17 = smov 0   ;;  %s1002_s18 = smov 0  }
   0xc   :  { %s1004_s19 = smov 0   ;;  %s1006_s20 = smov 0  }
   0xd LB: > { %1333 = sst [smem:[#allocation15_spill]] %s946_s17  ;;  %s1027_s21 = sadd.s32 4294967295, %s958_s20   ;;  %s958_s20 = sphi %s1006_s20, %s27_s20   ;;  %s954_s19 = sphi %s1004_s19, %s1360_s19   ;;  %s950_s18 = sphi %s1002_s18, %s1359_s18   ;;  %s946_s17 = sphi %s1000_s17, %s1358_s17   ;;  %s942_s16 = sphi %s998_s16, %s1362_s16   ;;  %s938_s15 = sphi %s996_s15, %s1361_s15  }
   0xe   : > { %1334 = sst [smem:[#allocation16_spill]] %s954_s19  ;;  %s626_s22 = sadd.s32 4294967294, %s958_s20  }
   0xf   : > { %s36_s23 = sadd.s32 1, %s954_s19  ;;  %s48_s24 = sadd.s32 1, %s946_s17 }
  0x10   : > { %p37_p0 = scmp.ge.s32.totalorder %s36_s23, 2  ;;  %p55_p1 = scmp.ne.s32.totalorder %s946_s17, %s942_s16 }
  0x11   : > { %p56_p2 = scmp.eq.s32.totalorder %s958_s20, 0  ;;  %p61_p3 = scmp.ne.s32.totalorder %s942_s16, %s938_s15 }
  0x12   : > { %s1364_s23 = smov (%p37_p0, %s36_s23), 0  ;;  %p62_p5 = scmp.eq.s32.totalorder %s1027_s21, 0 }
  0x13   : > { %1335 = sst [smem:[#allocation17_spill]] %s1364_s23  ;;  %p1039_p4 = por %p56_p2, %p55_p1 }
  0x14   : > { %s44_s26 = ssub.s32 %s954_s19, %s1364_s23  ;;  %p141_p6 = scmp.eq.s32.totalorder %s1027_s21, 1 }
  0x15   : > { %p46_p7 = scmp.eq.s32.totalorder %s44_s26, 0  ;;  %p1047_p8 = por %p62_p5, %p61_p3 }
  0x16   : > { %p1051_p9 = por %p141_p6, %p55_p1  ;;  %p147_p10 = scmp.eq.s32.totalorder %s626_s22, 1 }
  0x17   : > { %s1337_s27 = scalar_select %p1047_p8, 1, 0 }
  0x18   : > { %s1338_s28 = scalar_select %p1051_p9, 1, 0 }
  0x19   : > { %s1056_s29 = scalar_select %p46_p7, %s946_s17, %s48_s24  }
  0x1a   : > { %p1058_p11 = por %p147_p10, %p61_p3  ;;  %p674_p13 = scmp.lt.s32.totalorder %s958_s20, 2 }
  0x1b   : > { %1339 = sst [smem:[#allocation18_spill]] %s1056_s29  ;;  %s1065_s5 = sand.u32 1, %s946_s17  }
  0x1c   : > { %s1340_s30 = scalar_select %p1058_p11, 1, 0 }
  0x1d   : > { %s1321_s6 = sshll.u32 %s1065_s5, 4  ;;  %s1069_s7 = sshll.u32 %s954_s19, 7 }
  0x1e   : > { %p1073_p0 = pnand %p674_p13, %p1039_p4  ;;  %s218_s9 = sand.u32 1, %s958_s20  }
  0x1f   : > { %s1342_s1 = sld [smem:[#allocation20_spill]]  ;;  %s222_s13 = scalar_lea.vmem [#allocation5], %s1321_s6 }
  0x20   : > { %s1341_s8 = scalar_select %p1073_p0, 1, 0 }
  0x21   : > { %s231_s14 = sshll.u32 %s222_s13, 4  ;;  %s1089_s22 = scalar_lea.sflag [#allocation6], %s218_s9  ;;  %s1086_s14 = int_to_ptr.vmem [resolvable:$true] %s231_s14 }
  0x22   : > { %p1095_p3 = pneg %p1073_p0 }
  0x25   : > { %s1082_s12 = scalar_lea.hbm %s1342_s1, %s1069_s7  ;;  %s755_s11 = scalar_lea.hbm %s1342_s1, 512 }
  0x26   : > { %s750_s24 = scalar_lea.hbm %s1082_s12, 256  ;;  %p756_p6 = scmp.lt.u32.totalorder %s1082_s12, %s1342_s1 }
  0x27   : > { %p751_p2 = scmp.ne.s32.totalorder %s1082_s12, %s750_s24  ;;  %p757_p7 = scmp.lt.u32.totalorder %s755_s11, %s750_s24 }
  0x28   : > { %p759_p13 = scmp.lt.u32.totalorder %s750_s24, %s1082_s12 }
  0x29   : > { %p753_p4 = pnand %p1095_p3, %p751_p2  ;;  %p758_p10 = por %p757_p7, %p756_p6 }
  0x2b   : > { %p754_p5 = pneg %p753_p4  ;;  %p760_p12 = por %p759_p13, %p758_p10 }
  0x2d   : > { %p761_p1 = pnand %p760_p12, %p754_p5 }
  0x2f   : > { %764 = shalt.err (!%p761_p1)
}
  0x30   : > { %s765_s9 = scalar_lea.vmem %s1086_s14, 256  ;;  %s960_s26 = smov [#allocation5]  }
  0x31   : > { %p766_p2 = scmp.ne.s32.totalorder %s1086_s14, %s765_s9  ;;  %s770_s10 = sshll.u32 %s960_s26, 4  ;;  %s771_s10 = int_to_ptr.vmem [resolvable:$false] %s770_s10 }
  0x32   : > { %s772_s6 = scalar_lea.vmem %s771_s10, 512  ;;  %p773_p9 = scmp.lt.s32.totalorder %s1086_s14, %s771_s10 }
  0x33   : > { %p768_p4 = pnand %p766_p2, %p1095_p3  ;;  %p774_p8 = scmp.lt.s32.totalorder %s772_s6, %s765_s9 }
  0x35   : > { %p769_p11 = pneg %p768_p4  ;;  %p775_p6 = por %p774_p8, %p773_p9 }
  0x37   : > { %p776_p7 = pnand %p775_p6, %p769_p11 }
  0x39   : > { %779 = shalt.err (!%p776_p7)
}
  0x3a   : > { %s1326_s24 = smov 256   ;;  %s1327_s11 = smov 128  }
  0x3b   : > { %s1328_s13 = smov 8   ;;  %p257_p8 = scmp.lt.s32.totalorder %s958_s20, 3 }
  0x3c   : > { %663 = dma.hbm_to_vmem [thread:$0]  (!%p1073_p0), %s1082_s12, 256, %s1086_s14, %s1089_s22, %s1326_s24, %s1327_s11, %s1328_s13  }
  0x3d   : > { %p1344_p9 = scmp.ge.s32.totalorder %s958_s20, 1  ;;  %s1346_s0 = sld [smem:[#allocation19_spill]] }
  0x3e   : > { %s1347_s1 = sshll.u32 %s1065_s5, 4  ;;  %s633_s12 = sshll.u32 %s1065_s5, 3 }
  0x3f   : > { %p1125_p11 = pnand %p1344_p9, %p257_p8  ;;  %s199_s23 = scalar_lea.vmem [#allocation2], %s1347_s1 }
  0x40   : > { %s208_s19 = sshll.u32 %s199_s23, 4  ;;  %s196_s14 = scalar_lea.sflag [#allocation3], %s1065_s5  ;;  %s1137_s19 = int_to_ptr.vmem [resolvable:$true] %s208_s19 }
  0x41   : > { %s1345_s9 = scalar_select %p1125_p11, 1, 0 }
  0x43   : > { %s1133_s6 = scalar_lea.hbm %s1346_s0, %s1069_s7  ;;  %s785_s10 = scalar_lea.hbm %s1346_s0, 512 }
  0x44   : > { %s780_s24 = scalar_lea.hbm %s1133_s6, 256  ;;  %p786_p10 = scmp.lt.u32.totalorder %s1133_s6, %s1346_s0 }
  0x45   : > { %p781_p12 = scmp.ne.s32.totalorder %s1133_s6, %s780_s24  ;;  %p787_p13 = scmp.lt.u32.totalorder %s785_s10, %s780_s24 }
  0x46   : > { %p789_p4 = scmp.lt.u32.totalorder %s780_s24, %s1133_s6 }
  0x47   : > { %p783_p1 = pnand %p781_p12, %p1095_p3  ;;  %p788_p2 = por %p787_p13, %p786_p10 }
  0x49   : > { %p784_p5 = pneg %p783_p1  ;;  %p790_p6 = por %p789_p4, %p788_p2 }
  0x4b   : > { %p791_p7 = pnand %p790_p6, %p784_p5 }
  0x4d   : > { %794 = shalt.err (!%p791_p7)
}
  0x4e   : > { %s795_s1 = scalar_lea.vmem %s1137_s19, 256  ;;  %s964_s23 = smov [#allocation2]  }
  0x4f   : > { %p796_p8 = scmp.ne.s32.totalorder %s1137_s19, %s795_s1  ;;  %s800_s11 = sshll.u32 %s964_s23, 4  ;;  %s801_s11 = int_to_ptr.vmem [resolvable:$false] %s800_s11 }
  0x50   : > { %s802_s29 = scalar_lea.vmem %s801_s11, 512  ;;  %p803_p1 = scmp.lt.s32.totalorder %s1137_s19, %s801_s11 }
  0x51   : > { %p798_p9 = pnand %p796_p8, %p1095_p3  ;;  %p804_p11 = scmp.lt.s32.totalorder %s802_s29, %s795_s1 }
  0x53   : > { %p799_p12 = pneg %p798_p9  ;;  %p805_p10 = por %p804_p11, %p803_p1 }
  0x55   : > { %p806_p13 = pnand %p805_p10, %p799_p12 }
  0x57   : > { %809 = shalt.err (!%p806_p13)
}
  0x58   : > { %s1348_s24 = smov 8   ;;  %s1349_s13 = smov 128  }
  0x59   : > { %s1350_s26 = smov 256   ;;  %s1171_s1 = scalar_lea.hbm %s1318_s2, %s1069_s7 }
  0x5a   : > { %660 = dma.hbm_to_vmem [thread:$0]  (!%p1073_p0), %s1133_s6, 256, %s1137_s19, %s196_s14, %s1350_s26, %s1349_s13, %s1348_s24  }
  0x5b   : > { %s245_s11 = scalar_lea.vmem [#allocation7], %s633_s12  ;;  %s810_s0 = scalar_lea.hbm %s1171_s1, 128 }
  0x5c   : > { %s252_s29 = sshll.u32 %s245_s11, 4  ;;  %p811_p11 = scmp.ne.s32.totalorder %s1171_s1, %s810_s0  ;;  %s253_s29 = int_to_ptr.vmem [resolvable:$true] %s252_s29 }
  0x5d   : > { %s815_s6 = scalar_lea.hbm %s1318_s2, 256  ;;  %p816_p4 = scmp.lt.u32.totalorder %s1171_s1, %s1318_s2 }
  0x5e   : > { %p813_p5 = pnand %p811_p11, %p1095_p3  ;;  %p817_p6 = scmp.lt.u32.totalorder %s815_s6, %s810_s0 }
  0x5f   : > { %p819_p8 = scmp.lt.u32.totalorder %s810_s0, %s1171_s1 }
  0x60   : > { %p814_p2 = pneg %p813_p5  ;;  %p818_p7 = por %p817_p6, %p816_p4 }
  0x62   : > { %p820_p9 = por %p819_p8, %p818_p7 }
  0x64   : > { %p821_p12 = pnand %p820_p9, %p814_p2 }
  0x66   : > { %824 = shalt.err (!%p821_p12)
}
  0x67   : > { %s825_s5 = scalar_lea.vmem %s253_s29, 128  ;;  %s965_s12 = smov [#allocation7]  }
  0x68   : > { %p826_p1 = scmp.ne.s32.totalorder %s253_s29, %s825_s5  ;;  %s830_s24 = sshll.u32 %s965_s12, 4  ;;  %s831_s24 = int_to_ptr.vmem [resolvable:$false] %s830_s24 }
  0x69   : > { %s832_s17 = scalar_lea.vmem %s831_s24, 256  ;;  %p833_p11 = scmp.lt.s32.totalorder %s253_s29, %s831_s24 }
  0x6a   : > { %p828_p10 = pnand %p826_p1, %p1095_p3  ;;  %p834_p5 = scmp.lt.s32.totalorder %s832_s17, %s825_s5 }
  0x6c   : > { %p829_p13 = pneg %p828_p10  ;;  %p835_p0 = por %p834_p5, %p833_p11 }
  0x6e   : > { %p836_p4 = pnand %p835_p0, %p829_p13 }
  0x70   : > { %839 = shalt.err (!%p836_p4)
}
  0x71   : > { %p1351_p6 = scmp.ne.s32.totalorder %s1341_s8, 0  ;;  %p1352_p2 = scmp.ne.s32.totalorder %s1345_s9, 0 }
  0x72   : > { %s1196_s0 = sand.u32 (!%p1352_p2), 1, %s942_s16   ;;  %p1353_p0 = scmp.ne.s32.totalorder (!%p1352_p2), %s1337_s27, 0 }
  0x73   : > { %666 = dma.hbm_to_vmem [thread:$0]  (!%p1351_p6), %s1171_s1, 128, %s253_s29, %s1089_s22  }
  0x74   : > { %261 = sbr.rel (%p1352_p2) target bundleno = 204 (0xcc), region = 32  ;;  %s1199_s25 = sshll.u32 (!%p1352_p2), %s1196_s0, 4 }
  0x75   : > { %s264_s13 = scalar_lea.sflag (!%p1352_p2), [#allocation3], %s1196_s0  ;;  %s267_s26 = scalar_lea.vmem (!%p1352_p2), [#allocation2], %s1199_s25 }
  0x7b   : > { %921 = dma.done.wait (%p1353_p0), %s264_s13, 256  }
  0x7c   : > { %923 = vsyncadd (%p1353_p0), %s264_s13, 4294967040  ;;  %s272_s8 = sand.u32 1, %s1027_s21   ;;  %s276_s9 = scalar_lea.vmem [#allocation5], %s1199_s25 }
  0x7d   : > { %s273_s22 = scalar_lea.sflag [#allocation6], %s272_s8 }
  0x7e   : > { %925 = dma.done.wait (%p1353_p0), %s273_s22, 384  }
  0x7f   : > { %927 = vsyncadd (%p1353_p0), %s273_s22, 4294966912  ;;  %v334_v0 = vlaneseq  ;;  %s638_s10 = sshll.u32 %s1196_s0, 3  ;;  %v329_v9 = vld [vmem:[%s267_s26] sm:$0xff]  ;;  %v330_v15 = vld [vmem:[%s267_s26 + $0x8] sm:$0xff]  ;;  %s324_s27 = scalar_lea.vmem [#allocation9], %s1199_s25 }
  0x80   : > { %s285_s21 = scalar_lea.vmem [#allocation7], %s638_s10  ;;  %v331_v49 = vld [vmem:[%s276_s9] sm:$0xff]  ;;  %v332_v58 = vld [vmem:[%s276_s9 + $0x8] sm:$0xff]  ;;  %s461_s23 = sshll.u32 %s324_s27, 4  ;;  %s1220_s23 = int_to_ptr.vmem [resolvable:$true] %s461_s23 }
  0x81   : > { %v335_v1 = vshrl.u32 %v334_v0, 7  ;;  %v333_v10 = vld [vmem:[%s285_s21] sm:$0xff]  ;;  %s643_s1 = sshll.u32 %s950_s18, 7  ;;  %s428_s6 = scalar_lea.sflag [#allocation10], %s1196_s0 }
  0x82   : > { %s1227_s19 = scalar_lea.hbm %s1320_s4, %s643_s1  ;;  %s840_s14 = scalar_lea.vmem %s1220_s23, 256 }
  0x83   : > { %v336_v2 = vsub.s32 0, %v335_v1  ;;  %v342_v3 = vsub.s32 4, %v335_v1  ;;  %v348_v4 = vsub.s32 1, %v335_v1  ;;  %v354_v5 = vsub.s32 5, %v335_v1  ;;  %p841_p3 = scmp.ne.s32.totalorder %s1220_s23, %s840_s14  ;;  %p1354_p7 = scmp.ne.s32.totalorder %s1338_s28, 0 }
  0x84   : > { %v360_v6 = vsub.s32 2, %v335_v1  ;;  %v372_v7 = vsub.s32 3, %v335_v1  ;;  %v378_v8 = vsub.s32 7, %v335_v1  ;;  %v366_v17 = vsub.s32 6, %v335_v1  ;;  %s966_s7 = smov [#allocation9]  }
  0x85   : > { %v337_v11 = vrot.slane %v333_v10, %v336_v2  ;;  %v343_v12 = vrot.slane %v333_v10, %v342_v3  ;;  %v349_v13 = vrot.slane %v333_v10, %v348_v4  ;;  %v355_v14 = vrot.slane %v333_v10, %v354_v5  ;;  %p842_p8 = pnand %p841_p3, %p1354_p7  ;;  %s844_s5 = sshll.u32 %s966_s7, 4  ;;  %s845_s5 = int_to_ptr.vmem [resolvable:$false] %s844_s5 }
  0x86   : > { %v361_v16 = vrot.slane %v333_v10, %v360_v6  ;;  %v373_v18 = vrot.slane %v333_v10, %v372_v7  ;;  %v379_v19 = vrot.slane %v333_v10, %v378_v8  ;;  %v367_v30 = vrot.slane %v333_v10, %v366_v17  ;;  %s846_s12 = scalar_lea.vmem %s845_s5, 512  ;;  %p847_p12 = scmp.lt.s32.totalorder %s1220_s23, %s845_s5 }
  0x87   : > { %v338_v20 = vmul.f32 %v337_v11, %v329_v9  ;;  %v350_v21 = vmul.f32 %v349_v13, %v329_v9  ;;  %v339_v22 = vmul.f32 %v337_v11, %v330_v15  ;;  %v351_v23 = vmul.f32 %v349_v13, %v330_v15  ;;  %p843_p9 = pneg %p842_p8  ;;  %p848_p1 = scmp.lt.s32.totalorder %s846_s12, %s840_s14 }
  0x88   : > { %v374_v24 = vmul.f32 %v373_v18, %v329_v9  ;;  %v362_v29 = vmul.f32 %v361_v16, %v329_v9  ;;  %v375_v34 = vmul.f32 %v373_v18, %v330_v15  ;;  %v363_v37 = vmul.f32 %v361_v16, %v330_v15 }
  0x89   : > { %v344_v25 = vadd.f32 %v343_v12, %v338_v20  ;;  %v356_v26 = vadd.f32 %v355_v14, %v350_v21  ;;  %v345_v27 = vadd.f32 %v343_v12, %v339_v22  ;;  %v357_v28 = vadd.f32 %v355_v14, %v351_v23  ;;  %p849_p10 = por %p848_p1, %p847_p12 }
  0x8a   : > { %v380_v31 = vadd.f32 %v379_v19, %v374_v24  ;;  %v368_v38 = vadd.f32 %v367_v30, %v362_v29  ;;  %v381_v39 = vadd.f32 %v379_v19, %v375_v34  ;;  %v369_v40 = vadd.f32 %v367_v30, %v363_v37 }
  0x8b   : > { %v382_v32 = vmul.f32 0.5, %v344_v25  ;;  %v390_v33 = vmul.f32 0.5, %v356_v26  ;;  %v383_v35 = vmul.f32 0.5, %v345_v27  ;;  %v391_v36 = vmul.f32 0.5, %v357_v28  ;;  %p850_p13 = pnand %p849_p10, %p843_p9 }
  0x8c   : > { %v398_v41 = vmul.f32 0.5, %v368_v38  ;;  %v399_v42 = vmul.f32 0.5, %v369_v40 }
  0x8d   : > { %730 = vtanh.f32 %v382_v32 }
  0x8e   : > { %732 = vtanh.f32 %v390_v33 }
  0x8f   : > { %734 = vtanh.f32 %v380_v31 }
  0x90   : > { %736 = vtanh.f32 %v383_v35 }
  0x91   : > { %738 = vtanh.f32 %v391_v36 }
  0x92   : > { %740 = vtanh.f32 %v381_v39 }
  0x93   : > { %742 = vtanh.f32 %v398_v41 }
  0x94   : > { %744 = vtanh.f32 %v399_v42 }
  0x97   : > { %v731_v43 = vpop.eup %730 }
  0x98   : > { %v733_v44 = vpop.eup %732  ;;  %v386_v45 = vmul.f32 0.5, %v731_v43 }
  0x99   : > { %v735_v46 = vpop.eup %734  ;;  %v394_v47 = vmul.f32 0.5, %v733_v44 }
  0x9a   : > { %v737_v48 = vpop.eup %736  ;;  %v388_v50 = vadd.f32 0.5, %v386_v45 }
  0x9b   : > { %v739_v51 = vpop.eup %738  ;;  %v396_v52 = vadd.f32 0.5, %v394_v47  ;;  %v387_v53 = vmul.f32 0.5, %v737_v48 }
  0x9c   : > { %v410_v54 = vmul.f32 %v735_v46, %v388_v50  ;;  %v395_v55 = vmul.f32 0.5, %v739_v51  ;;  %v741_v56 = vpop.eup %740 }
  0x9d   : > { %v408_v57 = vmul.f32 %v396_v52, %v331_v49  ;;  %v389_v59 = vadd.f32 0.5, %v387_v53  ;;  %v743_v0 = vpop.eup %742 }
  0x9e   : > { %v397_v60 = vadd.f32 0.5, %v395_v55  ;;  %v745_v2 = vpop.eup %744  ;;  %v402_v3 = vmul.f32 0.5, %v743_v0 }
  0x9f   : > { %v412_v61 = vadd.f32 %v410_v54, %v408_v57  ;;  %v411_v62 = vmul.f32 %v741_v56, %v389_v59 }
  0xa0   : > { %v409_v63 = vmul.f32 %v397_v60, %v332_v58 }
  0xa1   : > { %746 = vtanh.f32 %v412_v61  ;;  %420 = vst [vmem:[%s324_s27] sm:$0xff] %v412_v61 }
  0xa2   : > { %v413_v1 = vadd.f32 %v411_v62, %v409_v63 }
  0xa4   : > { %748 = vtanh.f32 %v413_v1  ;;  %421 = vst [vmem:[%s324_s27 + $0x8] sm:$0xff] %v413_v1 }
  0xa5   : > { %853 = shalt.err (!%p850_p13)
}
  0xa6   : > { %s854_s24 = scalar_lea.hbm %s1227_s19, 256  ;;  %s858_s26 = scalar_lea.hbm %s1320_s4, 512 }
  0xa7   : > { %p855_p11 = scmp.ne.s32.totalorder %s1227_s19, %s854_s24  ;;  %p859_p6 = scmp.lt.u32.totalorder %s1227_s19, %s1320_s4 }
  0xa8   : > { %p860_p2 = scmp.lt.u32.totalorder %s858_s26, %s854_s24  ;;  %p862_p3 = scmp.lt.u32.totalorder %s854_s24, %s1227_s19 }
  0xa9   : > { %p856_p5 = pnand %p855_p11, %p1354_p7 }
  0xaa   : > { %p861_p0 = por %p860_p2, %p859_p6 }
  0xab   : > { %p857_p4 = pneg %p856_p5 }
  0xac   : > { %p863_p8 = por %p862_p3, %p861_p0 }
  0xae   : > { %p864_p9 = pnand %p863_p8, %p857_p4 }
  0xb0   : > { %867 = shalt.err (!%p864_p9)
}
  0xb1   : > { %s967_s9 = smov 128   ;;  %s968_s10 = smov 256   ;;  %v403_v4 = vmul.f32 0.5, %v745_v2  ;;  %v404_v5 = vadd.f32 0.5, %v402_v3  ;;  %v747_v6 = vpop.eup %746 }
  0xb2   : > { %s969_s21 = smov 8   ;;  %s317_s27 = scalar_lea.vmem [#allocation8], %s1199_s25  ;;  %v749_v9 = vpop.eup %748 }
  0xb3   : > { %654 = dma.vmem_to_hbm [thread:$0]  (%p1354_p7), %s1220_s23, 256, %s1227_s19, %s428_s6, %s967_s9, %s968_s10, %s969_s21   ;;  %v405_v7 = vadd.f32 0.5, %v403_v4  ;;  %v416_v8 = vmul.f32 %v747_v6, %v404_v5 }
  0xb4   : > { %s443_s11 = sshll.u32 %s317_s27, 4  ;;  %s1264_s23 = scalar_lea.hbm %s1319_s3, %s643_s1  ;;  %s1257_s11 = int_to_ptr.vmem [resolvable:$true] %s443_s11 }
  0xb5   : > { %418 = vst [vmem:[%s317_s27] sm:$0xff] %v416_v8  ;;  %v417_v10 = vmul.f32 %v749_v9, %v405_v7  ;;  %s423_s19 = scalar_lea.sflag [#allocation4], %s1196_s0  ;;  %s868_s25 = scalar_lea.vmem %s1257_s11, 256 }
  0xb6   : > { %p869_p12 = scmp.ne.s32.totalorder %s1257_s11, %s868_s25  ;;  %s970_s6 = smov [#allocation8]  }
  0xb7   : > { %419 = vst [vmem:[%s317_s27 + $0x8] sm:$0xff] %v417_v10  ;;  %s872_s7 = sshll.u32 %s970_s6, 4  ;;  %s873_s7 = int_to_ptr.vmem [resolvable:$false] %s872_s7 }
  0xb8   : > { %p870_p1 = pnand %p869_p12, %p1354_p7  ;;  %s874_s5 = scalar_lea.vmem %s873_s7, 512 }
  0xb9   : > { %p875_p13 = scmp.lt.s32.totalorder %s1257_s11, %s873_s7  ;;  %p876_p11 = scmp.lt.s32.totalorder %s874_s5, %s868_s25 }
  0xba   : > { %p871_p10 = pneg %p870_p1 }
  0xbb   : > { %p877_p5 = por %p876_p11, %p875_p13 }
  0xbd   : > { %p878_p4 = pnand %p877_p5, %p871_p10 }
  0xbf   : > { %881 = shalt.err (!%p878_p4)
}
  0xc0   : > { %s882_s18 = scalar_lea.hbm %s1264_s23, 256  ;;  %s886_s24 = scalar_lea.hbm %s1319_s3, 512 }
  0xc1   : > { %p883_p6 = scmp.ne.s32.totalorder %s1264_s23, %s882_s18  ;;  %p887_p3 = scmp.lt.u32.totalorder %s1264_s23, %s1319_s3 }
  0xc2   : > { %p888_p8 = scmp.lt.u32.totalorder %s886_s24, %s882_s18  ;;  %p890_p12 = scmp.lt.u32.totalorder %s882_s18, %s1264_s23 }
  0xc3   : > { %p884_p2 = pnand %p883_p6, %p1354_p7 }
  0xc4   : > { %p889_p9 = por %p888_p8, %p887_p3 }
  0xc5   : > { %p885_p0 = pneg %p884_p2 }
  0xc6   : > { %p891_p1 = por %p890_p12, %p889_p9 }
  0xc8   : > { %p892_p10 = pnand %p891_p1, %p885_p0 }
  0xca   : > { %895 = shalt.err (!%p892_p10)
}
  0xcb   : > { %653 = dma.vmem_to_hbm [thread:$0]  (%p1354_p7), %s1257_s11, 256, %s1264_s23, %s423_s19, %s967_s9, %s968_s10, %s969_s21  }
  0xcc PF: > { %s476_s26 = sand.u32 1, %s938_s15   ;;  %p1355_p13 = scmp.ne.s32.totalorder %s1340_s30, 0 }
  0xcd   : > { %p1356_p11 = scmp.ge.s32.totalorder %s958_s20, 2  ;;  %s477_s8 = scalar_lea.sflag [#allocation4], %s476_s26 }
  0xcf   : > { %p668_p5 = pnand %p1356_p11, %p1355_p13 }
  0xd1   : > { %929 = dma.done.wait (!%p668_p5), %s477_s8, 256  }
  0xd2   : > { %931 = vsyncadd (!%p668_p5), %s477_s8, 4294967040  ;;  %s486_s28 = scalar_lea.sflag [#allocation10], %s476_s26 }
  0xd3   : > { %933 = dma.done.wait (!%p668_p5), %s486_s28, 256  }
  0xd4   : > { %935 = vsyncadd (!%p668_p5), %s486_s28, 4294967040  ;;  %s27_s20 = sadd.s32 1, %s958_s20   ;;  %s1357_s0 = sld [smem:[#allocation15_spill]] }
  0xd5   : > { %p24_p4 = scmp.ge.s32.totalorder %s27_s20, 4   ;;  %s1358_s17 = sld [smem:[#allocation18_spill]] }
  0xd6   : > { %s1359_s18 = sld [smem:[#allocation16_spill]]  ;;  %s1360_s19 = sld [smem:[#allocation17_spill]] }
  0xd7   : > { %s1361_s15 = smov %s942_s16  ;;  %26 = sbr.rel (!%p24_p4) target bundleno = 13 (0xd), region = 118 }
  0xda   : > { %s1362_s16 = smov %s1357_s0 }
  0xde   :  { %491 = vsyncpa [#allocation3], 1 }
  0xdf   :  { %493 = vsyncpa [#allocation3 + $0x1], 1 }
  0xe0   :  { %494 = vsyncpa [#allocation6], 1 }
  0xe1   :  { %496 = vsyncpa [#allocation6 + $0x1], 1 }
  0xe2   :  { %497 = vsyncpa [#allocation4], 1 }
  0xe3   :  { %499 = vsyncpa [#allocation4 + $0x1], 1 }
  0xe4   :  { %500 = vsyncpa [#allocation10], 1 }
  0xe5   :  { %502 = vsyncpa [#allocation10 + $0x1], 1 }

</bundles_post_ra>
